<compile_context>
chip_gen: v7x
topology: tpu7x:2x2x1
jax: 0.10.0
libtpu: 0.0.40
codegen_flags: <defaults>
</compile_context>

<pallas_src>
import functools
import math

import jax
import jax.numpy as jnp
from jax.experimental import pallas as pl
from jax.experimental.pallas import tpu as pltpu


def _round_up(x, m):
    return (x + m - 1) // m * m


def _vmem_capacity_bytes():
    """Physical per-core VMEM; conservative 64 MiB (v7x) if the query fails."""
    try:
        return int(pltpu.get_tpu_info().vmem_capacity_bytes)
    except Exception:
        return 64 * 1024 * 1024


def _linvert_kernel(x_ref, w_ref, b_ref, o_ref, *, C, tm):
    """One (m-tile, batch) grid step.

    x_ref : (1, 8, tm*C) input dtype, lane-dense; [0, s, m*C + c] = x[b, s*M+m, c]
    w_ref : (8C, 8C)     bf16 = W.T (in-feature s*C+c on rows, out-feature on cols)
    b_ref : (1, 8C)      f32 bias
    o_ref : (1, 8, tm*C) output, same dtype as x
    """
    K = 8 * C
    xs = x_ref[0]                                                # (8, tm*C)

    # Vertical regroup fused in-kernel: (8, tm, C) -> (tm, 8C).  Single relayout
    # per tile; cast to bf16 first so the shuffle moves half the bytes.
    lhs = jnp.swapaxes(xs.astype(w_ref.dtype).reshape(8, tm, C), 0, 1)
    lhs = lhs.reshape(tm, K)

    # One fused MXU matmul (f32 accumulation); bias added once in the epilogue.
    y = jnp.dot(lhs, w_ref[...], preferred_element_type=jnp.float32)
    y = y + b_ref[...]                                           # (tm, 8C) f32

    # Inverse regroup + exact-f32 residual, stored lane-dense.
    yb = jnp.swapaxes(y.reshape(tm, 8, C), 0, 1).reshape(8, tm * C)
    o_ref[0] = (xs.astype(jnp.float32) + yb).astype(o_ref.dtype)


def prepare_linvert_params(w, b, compute_dtype=jnp.bfloat16):
    """One-time parameter prep (at init, NOT per forward call).

    w: (8C, 8C) nn.Linear weight [out_features, in_features];  b: (8C,)
    Returns w2 = W.T (8C, 8C) in compute_dtype and b2 = (1, 8C) float32.
    """
    K = w.shape[0]
    assert w.shape == (K, K) and K % 8 == 0
    w2 = jnp.transpose(w).astype(compute_dtype)
    b2 = b.reshape(1, K).astype(jnp.float32)
    return w2, b2


def _estimate_vmem_bytes(tm, C, K):
    """Conservative per-step VMEM footprint (double-buffered blocks + temps)."""
    Cp = _round_up(C, 128)
    blk = 8 * tm * C * 4                                 # one lane-dense f32 x/out block
    weight = 2 * (K * K * 2 + _round_up(K, 128) * 4)     # bf16 W.T + f32 bias, 2 buffers
    # Regroup/inverse-regroup intermediates pad C up to 128 lanes when C < 128.
    temps = tm * (24 * Cp * 4 + 4 * K * 4)
    return 4 * blk + weight + temps


def _pick_tile_rows(M, C, K, vmem_budget, target_block_bytes):
    """Largest legal m-tile: tm*C % 128 == 0 (or tm == M), VMEM-bounded."""
    step = max(8, 128 // math.gcd(C, 128))      # tm % step == 0  =>  tm*C % 128 == 0
    tm = max(step, (target_block_bytes // (8 * C * 4)) // step * step)
    while tm > step and _estimate_vmem_bytes(tm, C, K) > vmem_budget:
        tm = max(step, ((tm // 2) // step) * step)
    if tm >= M:
        tm = M                                  # single full-extent block (always legal)
    return tm, _estimate_vmem_bytes(tm, C, K)


def linvert_forward(x, w2, b2, *, target_block_bytes=4 << 20):
    """x: (B, N, C) with N % 8 == 0; w2/b2 from prepare_linvert_params."""
    B, N, C = x.shape
    assert N % 8 == 0, "LinVert needs the token dim to be a multiple of 8"
    M = N // 8
    K = 8 * C
    assert w2.shape == (K, K) and b2.shape == (1, K)

    x3 = x.reshape(B, 8, M * C)                 # free, layout-preserving reshape

    cap = _vmem_capacity_bytes()
    budget = max(min(int(0.70 * cap), cap - (8 << 20)), 16 << 20)
    tm, vmem_need = _pick_tile_rows(M, C, K, budget, target_block_bytes)
    num_m = pl.cdiv(M, tm)                      # partial edge block: Pallas drops OOB
                                                # output rows; padded input rows only
                                                # feed those dropped rows.
    # TODO(synk): for very large C (K >= ~4096) also tile the 8C output/weight
    # columns so the resident W.T slab fits VMEM; Pangu sizes (C <= 192) never hit it.

    # Always set the scoped-VMEM limit (v5e defaults to 16 MiB) and keep it
    # safely below physical VMEM (v7x has only 64 MiB).
    vmem_limit = int(min(max(vmem_need + (8 << 20), 32 << 20),
                         cap - (8 << 20), 100 << 20))

    # Megacore: lead with the larger parallel extent so both TCs stay busy.
    m_major = num_m >= B
    grid = (num_m, B) if m_major else (B, num_m)

    def xo_index(a, b):
        i, bi = (a, b) if m_major else (b, a)
        return (bi, 0, i)

    def const_index(a, b):
        return (0, 0)

    out3 = pl.pallas_call(
        functools.partial(_linvert_kernel, C=C, tm=tm),
        out_shape=jax.ShapeDtypeStruct((B, 8, M * C), x.dtype),
        grid=grid,
        in_specs=[
            pl.BlockSpec((1, 8, tm * C), xo_index),
            pl.BlockSpec((K, K), const_index),      # W.T: constant index => resident
            pl.BlockSpec((1, K), const_index),      # bias: resident
        ],
        out_specs=pl.BlockSpec((1, 8, tm * C), xo_index),
        compiler_params=pltpu.CompilerParams(
            dimension_semantics=("parallel", "parallel"),
            vmem_limit_bytes=vmem_limit),
    )(x3, w2, b2)

    return out3.reshape(B, N, C)                # free reshape back


if __name__ == "__main__":
    key = jax.random.PRNGKey(0)
    k_x, k_w, k_b = jax.random.split(key, 3)

    # Small shapes consistent with the module: C in_features, N = 8*M tokens.
    B, M, C = 2, 8, 16                          # N = 64, fc1 is Linear(128, 128)
    N, K = 8 * M, 8 * C

    x = jax.random.normal(k_x, (B, N, C), dtype=jnp.float32)
    bound = 1.0 / (K ** 0.5)                    # nn.Linear default init range
    w = jax.random.uniform(k_w, (K, K), minval=-bound, maxval=bound, dtype=jnp.float32)
    b = jax.random.uniform(k_b, (K,), minval=-bound, maxval=bound, dtype=jnp.float32)

    w2, b2 = prepare_linvert_params(w, b)       # one-time prep (bf16, pre-transposed)
    out = jax.block_until_ready(linvert_forward(x, w2, b2))

    # --- references (PyTorch semantics), computed in high precision ------------
    hp = jax.lax.Precision.HIGHEST
    x2 = x.reshape(B, 8, M, C).transpose(0, 2, 1, 3).reshape(B, M, K)

    def regroup_back(y):
        return y.reshape(B, M, 8, C).transpose(0, 2, 1, 3).reshape(B, N, C)

    ref_f32 = x + regroup_back(jnp.dot(x2, w.T, precision=hp) + b)

    # Reference matching the kernel's numerics: bf16 matmul operands,
    # f32 accumulation, exact f32 bias + residual.
    xb = x2.astype(jnp.bfloat16).astype(jnp.float32)
    wb = w.astype(jnp.bfloat16).astype(jnp.float32)
    ref_bf16 = x + regroup_back(jnp.dot(xb, wb.T, precision=hp) + b)

    assert out.shape == (B, N, C)
    assert jnp.allclose(out, ref_bf16, atol=2e-3, rtol=2e-3), "mismatch vs bf16-matched ref"
    assert jnp.allclose(out, ref_f32, atol=5e-2, rtol=5e-2), "mismatch vs f32 ref"
    print("KERNEL_OK")
</pallas_src>

<mosaic_0001>
module attributes {stable_mosaic.version = 11 : i64} {
  func.func @_linvert_kernel(%arg0: i32, %arg1: i32, %arg2: memref<1x8x128xf32, #tpu.memory_space<vmem>>, %arg3: memref<128x128xbf16, #tpu.memory_space<vmem>>, %arg4: memref<1x128xf32, #tpu.memory_space<vmem>>, %arg5: memref<1x8x128xf32, #tpu.memory_space<vmem>>) attributes {dimension_semantics = [#tpu.dimension_semantics<parallel>, #tpu.dimension_semantics<parallel>], iteration_bounds = array<i64: 2, 1>, scalar_prefetch = 0 : i64, scratch_operands = 0 : i64, tpu.core_type = #tpu.core_type<tc>, window_params = [{transform_indices = @transform_0, window_bounds = array<i64: 1, 8, 128>}, {pipeline_mode = #tpu.pipeline_mode<synchronous>, transform_indices = @transform_1, window_bounds = array<i64: 128, 128>}, {pipeline_mode = #tpu.pipeline_mode<synchronous>, transform_indices = @transform_2, window_bounds = array<i64: 1, 128>}, {transform_indices = @transform_3, window_bounds = array<i64: 1, 8, 128>}]} {
    %c0 = arith.constant 0 : index
    %c0_0 = arith.constant 0 : index
    %c0_1 = arith.constant 0 : index
    %0 = vector.load %arg2[%c0, %c0_0, %c0_1] : memref<1x8x128xf32, #tpu.memory_space<vmem>>, vector<1x8x128xf32>
    %1 = vector.shape_cast %0 : vector<1x8x128xf32> to vector<8x128xf32>
    %2 = arith.truncf %1 : vector<8x128xf32> to vector<8x128xbf16>
    %3 = vector.shape_cast %2 : vector<8x128xbf16> to vector<8x8x16xbf16>
    %4 = tpu.transpose %3, [1, 0, 2] : vector<8x8x16xbf16> -> vector<8x8x16xbf16>
    %5 = vector.shape_cast %4 : vector<8x8x16xbf16> to vector<8x128xbf16>
    %c0_2 = arith.constant 0 : index
    %c0_3 = arith.constant 0 : index
    %6 = vector.load %arg3[%c0_2, %c0_3] : memref<128x128xbf16, #tpu.memory_space<vmem>>, vector<128x128xbf16>
    %cst = arith.constant dense<0.000000e+00> : vector<8x128xf32>
    %7 = tpu.matmul %5, %6, %cst {dimension_numbers = #tpu.dot_dimension_numbers<[1], [0], [0], [1], [0, 0, 1, 1], [], []>} : vector<8x128xbf16>, vector<128x128xbf16>, vector<8x128xf32> -> vector<8x128xf32>
    %c0_4 = arith.constant 0 : index
    %c0_5 = arith.constant 0 : index
    %8 = vector.load %arg4[%c0_4, %c0_5] : memref<1x128xf32, #tpu.memory_space<vmem>>, vector<1x128xf32>
    %9 = vector.broadcast %8 : vector<1x128xf32> to vector<8x128xf32>
    %10 = arith.addf %7, %9 : vector<8x128xf32>
    %11 = vector.shape_cast %10 : vector<8x128xf32> to vector<8x8x16xf32>
    %12 = tpu.transpose %11, [1, 0, 2] : vector<8x8x16xf32> -> vector<8x8x16xf32>
    %13 = vector.shape_cast %12 : vector<8x8x16xf32> to vector<8x128xf32>
    %14 = arith.addf %1, %13 : vector<8x128xf32>
    %c0_6 = arith.constant 0 : index
    %c0_7 = arith.constant 0 : index
    %c0_8 = arith.constant 0 : index
    %15 = vector.load %arg5[%c0_6, %c0_7, %c0_8] : memref<1x8x128xf32, #tpu.memory_space<vmem>>, vector<1x8x128xf32>
    %16 = vector.shape_cast %15 : vector<1x8x128xf32> to vector<8x128xf32>
    %17 = vector.shape_cast %14 : vector<8x128xf32> to vector<1x8x128xf32>
    tpu.vector_store %arg5[%c0_6, %c0_7, %c0_8], %17 {strides = array<i32>} : memref<1x8x128xf32, #tpu.memory_space<vmem>>, vector<1x8x128xf32>,
    return
  }
  func.func @transform_0(%arg0: i32, %arg1: i32) -> (i32, i32, i32) {
    %c0_i32 = arith.constant 0 : i32
    %c0_i32_0 = arith.constant 0 : i32
    return %arg0, %c0_i32, %arg1 : i32, i32, i32
  }
  func.func @transform_1(%arg0: i32, %arg1: i32) -> (i32, i32) {
    %c0_i32 = arith.constant 0 : i32
    %c0_i32_0 = arith.constant 0 : i32
    %c0_i32_1 = arith.constant 0 : i32
    return %c0_i32, %c0_i32_0 : i32, i32
  }
  func.func @transform_2(%arg0: i32, %arg1: i32) -> (i32, i32) {
    %c0_i32 = arith.constant 0 : i32
    %c0_i32_0 = arith.constant 0 : i32
    %c0_i32_1 = arith.constant 0 : i32
    return %c0_i32, %c0_i32_0 : i32, i32
  }
  func.func @transform_3(%arg0: i32, %arg1: i32) -> (i32, i32, i32) {
    %c0_i32 = arith.constant 0 : i32
    %c0_i32_0 = arith.constant 0 : i32
    return %arg0, %c0_i32, %arg1 : i32, i32, i32
  }
}

</mosaic_0001>

<bundles_post_ra>
// kernel: tpu_custom_call.1
= control target key start
LH: loop header
LB: loop body
LE: loop exit
PB: predicated region body
PF: predicated region fallthrough
CT: control target
= control target key end

     0   :  { %8 = vsyncpa [#allocation3], 0  ;;  %s1967_s0 = inlined_call_operand.hbm [shape: f32[2,8,128], index: 0, kind: input, shape index: {}]   ;;  %s1968_s1 = inlined_call_operand.hbm [shape: bf16[128,128], index: 1, kind: input, shape index: {}]   ;;  %s1969_s2 = inlined_call_operand.vmem [shape: f32[1,128], index: 2, kind: input, shape index: {}]   ;;  %s1970_s3 = inlined_call_operand.hbm [shape: f32[2,8,128], index: 3, kind: output, shape index: {}]  }
   0x1   :  { %10 = vsyncpa [#allocation3 + $0x1], 0 }
   0x2   :  { %11 = vsyncpa [#allocation6], 0 }
   0x3   :  { %12 = vsyncpa [#allocation4], 0 }
   0x4   :  { %14 = vsyncpa [#allocation4 + $0x1], 0  ;;  %s1602_s12 = smov 0   ;;  %s1604_s13 = smov 0  }
   0x5   :  { %s1606_s14 = smov 0   ;;  %s1608_s15 = smov 0  }
   0x6   :  { %s1610_s16 = smov 0   ;;  %s1612_s17 = smov 0  }
   0x7 LB: > { %s1255_s18 = sadd.s32 4294967295, %s1563_s17   ;;  %s1256_s19 = sadd.s32 4294967294, %s1563_s17   ;;  %s1563_s17 = sphi %s1612_s17, %s20_s17   ;;  %s1559_s16 = sphi %s1610_s16, %s1994_s16   ;;  %s1555_s15 = sphi %s1608_s15, %s1993_s15   ;;  %s1551_s14 = sphi %s1606_s14, %s1992_s14   ;;  %s1547_s13 = sphi %s1604_s13, %s1991_s13   ;;  %s1543_s12 = sphi %s1602_s12, %s1990_s12  }
   0x8   : > { %p54_p0 = scmp.ne.s32.totalorder %s1547_s13, %s1543_s12  ;;  %p1636_p1 = scmp.eq.s32.totalorder %s1255_s18, 0 }
   0x9   : > { %p1640_p2 = scmp.eq.s32.totalorder %s1255_s18, 1  ;;  %p128_p3 = scmp.eq.s32.totalorder %s1256_s19, 1 }
   0xa   : > { %s1975_s20 = scalar_select %p1636_p1, 1, 0 }
   0xb   : > { %s1976_s21 = scalar_select %p1640_p2, 1, 0 }
   0xc   : > { %p1646_p4 = por %p1636_p1, %p54_p0  ;;  %p1257_p5 = scmp.ge.s32.totalorder %s1563_s17, 1 }
   0xd   : > { %p1651_p6 = por %p128_p3, %p54_p0  ;;  %p135_p7 = scmp.lt.s32.totalorder %s1563_s17, 3 }
   0xe   : > { %s1977_s22 = scalar_select %p1646_p4, 1, 0 }
   0xf   : > { %s1978_s23 = scalar_select %p1651_p6, 1, 0 }
  0x10   : > { %p1656_p8 = pnand %p1257_p5, %p135_p7  ;;  %s1565_s25 = smov [#allocation5]  }
  0x11   : > { %s147_s26 = sshll.u32 %s1565_s25, 4  ;;  %s32_s28 = sadd.s32 1, %s1559_s16  ;;  %s148_s26 = int_to_ptr.vmem [resolvable:$true] %s147_s26 }
  0x12   : > { %s1979_s24 = scalar_select %p1656_p8, 1, 0 }
  0x13   : > { %p1332_p9 = pneg %p1656_p8  ;;  %s1419_s4 = scalar_lea.hbm %s1968_s1, 1024 }
  0x14   : > { %p1420_p12 = scmp.ne.s32.totalorder %s1968_s1, %s1419_s4  ;;  %p1426_p5 = scmp.lt.u32.totalorder %s1419_s4, %s1968_s1 }
  0x15   : > { %p1665_p11 = pnand %p1332_p9, %p1636_p1 }
  0x17   : > { %p1421_p13 = pneg %p1665_p11 }
  0x19   : > { %p1422_p0 = pnand %p1421_p13, %p1420_p12 }
  0x1b   : > { %p1423_p3 = pneg %p1422_p0 }
  0x1d   : > { %p1428_p7 = pnand %p1426_p5, %p1423_p3 }
  0x1f   : > { %1431 = shalt.err (!%p1428_p7)
}
  0x20   : > { %s1432_s9 = scalar_lea.vmem %s148_s26, 1024  ;;  %p1440_p1 = scmp.lt.s32.totalorder %s148_s26, %s148_s26 }
  0x21   : > { %p1433_p9 = scmp.ne.s32.totalorder %s148_s26, %s1432_s9  ;;  %p1441_p4 = scmp.lt.s32.totalorder %s1432_s9, %s1432_s9 }
  0x23   : > { %p1435_p10 = pnand %p1433_p9, %p1421_p13  ;;  %p1442_p8 = por %p1441_p4, %p1440_p1 }
  0x25   : > { %p1436_p6 = pneg %p1435_p10 }
  0x27   : > { %p1443_p2 = pnand %p1442_p8, %p1436_p6 }
  0x29   : > { %1446 = shalt.err (!%p1443_p2)
}
  0x2a   : > { %s1566_s10 = smov 64   ;;  %s1567_s11 = smov 4  }
  0x2b   : > { %1335 = dma.hbm_to_vmem [thread:$0]  (!%p1665_p11), %s1968_s1, 1024, %s148_s26, [#allocation6], %s1566_s10, %s1566_s10, %s1567_s11  }
  0x2c   : > { %p34_p1 = scmp.ge.s32.totalorder %s32_s28, 2  ;;  %s41_s25 = sadd.s32 1, %s1551_s14 }
  0x2d   : > { %p48_p2 = scmp.ne.s32.totalorder %s1551_s14, %s1547_s13  ;;  %p49_p4 = scmp.eq.s32.totalorder %s1563_s17, 0 }
  0x2e   : > { %s1996_s28 = smov (%p34_p1, %s32_s28), 0  ;;  %p1982_p8 = scmp.ne.s32.totalorder %s1976_s21, 0 }
  0x2f   : > { %p1692_p6 = por %p49_p4, %p48_p2  ;;  %s36_s27 = ssub.s32 %s1559_s16, %s1996_s28 }
  0x30   : > { %p1698_p10 = por %p1982_p8, %p48_p2  ;;  %p1345_p12 = scmp.lt.s32.totalorder %s1563_s17, 2 }
  0x31   : > { %p39_p11 = scmp.eq.s32.totalorder %s36_s27, 0  ;;  %s164_s26 = sand.u32 1, %s1551_s14  }
  0x32   : > { %s1260_s4 = sshll.u32 %s164_s26, 3  ;;  %s1261_s6 = sshll.u32 %s1559_s16, 7 }
  0x33   : > { %s1707_s5 = scalar_select %p39_p11, %s1551_s14, %s41_s25  }
  0x34   : > { %s1713_s9 = scalar_lea.hbm %s1967_s0, %s1261_s6  ;;  %s168_s21 = scalar_lea.vmem [#allocation2], %s1260_s4 }
  0x35   : > { %s176_s10 = sshll.u32 %s168_s21, 4  ;;  %p1719_p13 = pnand %p1345_p12, %p1692_p6  ;;  %s1715_s10 = int_to_ptr.vmem [resolvable:$true] %s176_s10 }
  0x36   : > { %s165_s18 = scalar_lea.sflag [#allocation3], %s164_s26  ;;  %s1447_s19 = scalar_lea.hbm %s1713_s9, 128 }
  0x37   : > { %p1448_p0 = scmp.ne.s32.totalorder %s1713_s9, %s1447_s19  ;;  %p1449_p3 = pneg %p1719_p13 }
  0x38   : > { %s1452_s4 = scalar_lea.hbm %s1967_s0, 256  ;;  %p1453_p9 = scmp.lt.u32.totalorder %s1713_s9, %s1967_s0 }
  0x39   : > { %p1450_p5 = pnand %p1449_p3, %p1448_p0  ;;  %p1454_p1 = scmp.lt.u32.totalorder %s1452_s4, %s1447_s19 }
  0x3a   : > { %p1456_p4 = scmp.lt.u32.totalorder %s1447_s19, %s1713_s9 }
  0x3b   : > { %p1451_p7 = pneg %p1450_p5  ;;  %p1455_p2 = por %p1454_p1, %p1453_p9 }
  0x3d   : > { %p1457_p6 = por %p1456_p4, %p1455_p2 }
  0x3f   : > { %p1458_p8 = pnand %p1457_p6, %p1451_p7 }
  0x41   : > { %1461 = shalt.err (!%p1458_p8)
}
  0x42   : > { %s1462_s26 = scalar_lea.vmem %s1715_s10, 128  ;;  %s1568_s7 = smov [#allocation2]  }
  0x43   : > { %p1463_p12 = scmp.ne.s32.totalorder %s1715_s10, %s1462_s26  ;;  %s1467_s8 = sshll.u32 %s1568_s7, 4  ;;  %s1468_s8 = int_to_ptr.vmem [resolvable:$false] %s1467_s8 }
  0x44   : > { %s1469_s21 = scalar_lea.vmem %s1468_s8, 256  ;;  %p1470_p5 = scmp.lt.s32.totalorder %s1715_s10, %s1468_s8 }
  0x45   : > { %p1465_p11 = pnand %p1463_p12, %p1449_p3  ;;  %p1471_p9 = scmp.lt.s32.totalorder %s1469_s21, %s1462_s26 }
  0x47   : > { %p1466_p0 = pneg %p1465_p11  ;;  %p1472_p1 = por %p1471_p9, %p1470_p5 }
  0x49   : > { %p1473_p2 = pnand %p1472_p1, %p1466_p0 }
  0x4b   : > { %1476 = shalt.err (!%p1473_p2)
}
  0x4c   : > { %1339 = dma.hbm_to_vmem [thread:$0]  (!%p1719_p13), %s1713_s9, 128, %s1715_s10, %s165_s18  }
  0x4d   : > { %p1985_p7 = scmp.ne.s32.totalorder %s1979_s24, 0 }
  0x4e   : > { %s1751_s19 = sand.u32 (!%p1985_p7), 1, %s1547_s13   ;;  %p1986_p3 = scmp.ne.s32.totalorder (!%p1985_p7), %s1977_s22, 0 }
  0x4f   : > { %185 = sbr.rel (%p1985_p7) target bundleno = 902 (0x386), region = 32  ;;  %s1263_s25 = sshll.u32 (!%p1985_p7), %s1751_s19, 3 }
  0x50   : > { %s188_s27 = scalar_lea.sflag (!%p1985_p7), [#allocation3], %s1751_s19  ;;  %s191_s4 = scalar_lea.vmem (!%p1985_p7), [#allocation2], %s1263_s25 }
  0x56   : > { %1530 = dma.done.wait (%p1986_p3), %s188_s27, 128  }
  0x57   : > { %1532 = vsyncadd (%p1986_p3), %s188_s27, 4294967168  ;;  %p1987_p13 = scmp.ne.s32.totalorder %s1975_s20, 0 }
  0x59   : > { %1534 = dma.done.wait (%p1987_p13), [#allocation6], 1024  }
  0x5a   : > { %1536 = vsyncadd (%p1987_p13), [#allocation6], 4294966272  ;;  %v1765_v0 = vld [vmem:[%s191_s4] sm:$0xff]  ;;  %s1569_s24 = smov 80   ;;  %s1570_s9 = smov 112   ;;  %v1411_v2 = vld [vmem:[#allocation5] sm:$0xff]   ;;  %v247_v9 = vlaneseq }
  0x5b   : > { %v220_v1 = vpack.c.bf16 %v1765_v0, %v1765_v0  ;;  %s1571_s10 = smov 64   ;;  %s1572_s22 = smov 96   ;;  %v1576_v3 = vmov 0.0   ;;  %v1412_v4 = vld [vmem:[#allocation5 + $0x8] sm:$0xff]   ;;  %v1413_v5 = vld [vmem:[#allocation5 + $0x10] sm:$0xff]   ;;  %v1414_v6 = vld [vmem:[#allocation5 + $0x18] sm:$0xff]  }
  0x5c   : > { %s1573_s11 = smov 32   ;;  %s1574_s20 = smov 48   ;;  %1304 = vmatprep.subr.bf16.mxu0 %v1576_v3  ;;  %v1577_v7 = vmov 1983009808   ;;  %v248_v13 = vshrl.u32 %v247_v9, 7  ;;  %v1579_v38 = vmov 0  }
  0x5d   : > { %228 = vrot.lane.b32.xlu1 %v220_v1, %s1569_s24  ;;  %222 = vrot.lane.b32.xlu0 %v220_v1, %s1570_s9  ;;  %s1575_s18 = smov 16   ;;  %v245_v8 = vunpack.c.l.s4 %v1577_v7  ;;  %v1578_v14 = vmov 1934713408   ;;  %vm1580_vm0 = vmmov 0   ;;  %vm549_vm1 = vcmask 130048   ;;  %s1292_s26 = sshll.u32 %s1555_s15, 7 }
  0x5e   : > { %1305 = vmatpush3.bf16.msra.mxu0 %v1411_v2  ;;  %v262_v15 = vunpack.c.l.s4 %v1578_v14  ;;  %1320 = vmatprep.mubr.msk.bf16.mxu0 %vm1580_vm0, %v1576_v3  ;;  %vm553_vm2 = vcmask 261120   ;;  %vm556_vm3 = vcmask 392192   ;;  %vm559_vm4 = vcmask 523264   ;;  %s217_s7 = scalar_lea.vmem [#allocation7], %s1263_s25  ;;  %s1918_s4 = scalar_lea.hbm %s1970_s3, %s1292_s26 }
  0x5f   : > { %1306 = vmatprep.subr.bf16.mxu0 %v1576_v3  ;;  %v246_v12 = vunpack.c.0.s8 %v245_v8  ;;  %vm562_vm5 = vcmask 654336   ;;  %vm565_vm6 = vcmask 785408   ;;  %vm568_vm7 = vcmask 916480   ;;  %s1165_s8 = sshll.u32 %s217_s7, 4  ;;  %s1151_s15 = scalar_lea.sflag [#allocation4], %s1751_s19  ;;  %s1920_s8 = int_to_ptr.vmem [resolvable:$true] %s1165_s8 }
  0x60   : > { %v263_v20 = vunpack.c.0.s8 %v262_v15  ;;  %s1477_s25 = scalar_lea.vmem %s1920_s8, 128 }
  0x61   : > { %231 = vrot.lane.b32.xlu1 %v220_v1, %s1571_s10  ;;  %225 = vrot.lane.b32.xlu0 %v220_v1, %s1572_s22  ;;  %v1781_v18 = vsub.s32 %v246_v12, %v248_v13  ;;  %p1478_p4 = scmp.ne.s32.totalorder %s1920_s8, %s1477_s25 }
  0x62   : > { %1307 = vmatpush3.bf16.msra.mxu0 %v1412_v4  ;;  %v1784_v25 = vsub.s32 %v263_v20, %v248_v13 }
  0x63   : > { %1308 = vmatprep.subr.bf16.mxu0 %v1576_v3  ;;  %p1479_p6 = pnand %p1478_p4, %p1698_p10 }
  0x65   : > { %237 = vrot.lane.b32.xlu1 %v220_v1, %s1573_s11  ;;  %234 = vrot.lane.b32.xlu0 %v220_v1, %s1574_s20  ;;  %p1480_p8 = pneg %p1479_p6 }
  0x66   : > { %1309 = vmatpush3.bf16.msra.mxu0 %v1413_v5 }
  0x67   : > { %1310 = vmatprep.subr.bf16.mxu0 %v1576_v3 }
  0x69   : > { %240 = vrot.lane.b32.xlu0 %v220_v1, %s1575_s18 }
  0x6a   : > { %1311 = vmatpush3.bf16.msra.mxu0 %v1414_v6 }
  0x6b   : > { %1312 = vmatprep.subr.bf16.mxu0 %v1576_v3 }
  0xcf   : > { %v229_v10 = vpop.permute.xlu1 %228  ;;  %v223_v11 = vpop.permute.xlu0 %222 }
  0xd3   : > { %v232_v16 = vpop.permute.xlu1 %231  ;;  %v226_v17 = vpop.permute.xlu0 %225 }
  0xd4   : > { %v243_v19 = vcombine.low %v220_v1, %v232_v16 }
  0xd6   : > { %v250_v23 = vrot.slane %v243_v19, %v1781_v18 }
  0xd7   : > { %v238_v21 = vpop.permute.xlu1 %237  ;;  %v235_v22 = vpop.permute.xlu0 %234 }
  0xd8   : > { %v251_v24 = vcombine.low %v226_v17, %v238_v21  ;;  %v277_v27 = vcombine.low %v223_v11, %v235_v22 }
  0xda   : > { %v258_v26 = vrot.slane %v251_v24, %v1781_v18  ;;  %v284_v34 = vrot.slane %v277_v27, %v1781_v18 }
  0xdb   : > { %v241_v28 = vpop.permute.xlu0 %240 }
  0xdc   : > { %v259_v29 = vcombine.low %v250_v23, %v258_v26  ;;  %v260_v30 = vcombine.high %v250_v23, %v258_v26  ;;  %v285_v31 = vcombine.low %v229_v10, %v241_v28 }
  0xde   : > { %v267_v32 = vrot.slane %v259_v29, %v1784_v25  ;;  %v292_v33 = vrot.slane %v285_v31, %v1781_v18  ;;  %v274_v35 = vrot.slane %v260_v30, %v1784_v25 }
  0xe0   : > { %v293_v36 = vcombine.low %v284_v34, %v292_v33  ;;  %v294_v37 = vcombine.high %v284_v34, %v292_v33  ;;  %v275_v39 = vcombine.high %v267_v32, %v1579_v38  ;;  %v276_v42 = vcombine.high %v274_v35, %v1579_v38 }
  0xe1   : > { %v315_v43 = vshrl.u32 %v267_v32, 16  ;;  %v331_v49 = vshrl.u32 %v274_v35, 16 }
  0xe2   : > { %v301_v40 = vrot.slane %v293_v36, %v1784_v25  ;;  %v308_v41 = vrot.slane %v294_v37, %v1784_v25  ;;  %v323_v48 = vshrl.u32 %v275_v39, 16  ;;  %v339_v56 = vshrl.u32 %v276_v42, 16  ;;  %v1415_v36 = vld [vmem:[#allocation5 + $0x20] sm:$0xff]  }
  0xe3   : > { %1313 = vmatpush3.bf16.msra.mxu0 %v1415_v36 }
  0xe4   : > { %v309_v44 = vcombine.high %v301_v40, %v1579_v38  ;;  %v310_v45 = vcombine.high %v308_v41, %v1579_v38  ;;  %v313_v46 = vpack.i.b16 %v301_v40, %v267_v32  ;;  %v316_v47 = vshrl.u32 %v301_v40, 16  ;;  %1314 = vmatprep.subr.bf16.mxu0 %v1576_v3 }
  0xe5   : > { %v329_v50 = vpack.i.b16 %v308_v41, %v274_v35  ;;  %v332_v51 = vshrl.u32 %v308_v41, 16 }
  0xe6   : > { %v317_v52 = vpack.i.b16 %v316_v47, %v315_v43  ;;  %v321_v53 = vpack.i.b16 %v309_v44, %v275_v39  ;;  %v324_v54 = vshrl.u32 %v309_v44, 16  ;;  %v337_v55 = vpack.i.b16 %v310_v45, %v276_v42 }
  0xe7   : > { %v333_v57 = vpack.i.b16 %v332_v51, %v331_v49  ;;  %v340_v58 = vshrl.u32 %v310_v45, 16  ;;  %v343_v59 = vcombine.low %v313_v46, %v329_v50  ;;  %v1416_v45 = vld [vmem:[#allocation5 + $0x28] sm:$0xff]  }
  0xe8   : > { %v325_v60 = vpack.i.b16 %v324_v54, %v323_v48  ;;  %v351_v61 = vcombine.low %v321_v53, %v337_v55  ;;  %1315 = vmatpush3.bf16.msra.mxu0 %v1416_v45  ;;  %v1417_v53 = vld [vmem:[#allocation5 + $0x30] sm:$0xff]  }
  0xe9   : > { %v341_v62 = vpack.i.b16 %v340_v58, %v339_v56  ;;  %v377_v63 = vcombine.low %v317_v52, %v333_v57  ;;  %v350_v1 = vrot.slane %v343_v59, %v1781_v18  ;;  %1316 = vmatprep.subr.bf16.mxu0 %v1576_v3 }
  0xea   : > { %v358_v2 = vrot.slane %v351_v61, %v1781_v18  ;;  %v1418_v61 = vld [vmem:[#allocation5 + $0x38] sm:$0xff]  }
  0xeb   : > { %v385_v4 = vcombine.low %v325_v60, %v341_v62  ;;  %v384_v7 = vrot.slane %v377_v63, %v1781_v18 }
  0xec   : > { %v359_v5 = vcombine.low %v350_v1, %v358_v2  ;;  %v360_v6 = vcombine.high %v350_v1, %v358_v2  ;;  %1317 = vmatpush3.bf16.msra.mxu0 %v1417_v53 }
  0xed   : > { %v392_v8 = vrot.slane %v385_v4, %v1781_v18  ;;  %1318 = vmatprep.subr.bf16.mxu0 %v1576_v3 }
  0xee   : > { %v367_v9 = vrot.slane %v359_v5, %v1784_v25  ;;  %v374_v10 = vrot.slane %v360_v6, %v1784_v25 }
  0xef   : > { %v393_v11 = vcombine.low %v384_v7, %v392_v8  ;;  %v394_v12 = vcombine.high %v384_v7, %v392_v8 }
  0xf0   : > { %v375_v13 = vcombine.high %v367_v9, %v1579_v38  ;;  %v376_v16 = vcombine.high %v374_v10, %v1579_v38  ;;  %v415_v17 = vshrl.u32 %v367_v9, 16  ;;  %v431_v26 = vshrl.u32 %v374_v10, 16  ;;  %1319 = vmatpush3.bf16.msra.mxu0 %v1418_v61 }
  0xf1   : > { %v401_v14 = vrot.slane %v393_v11, %v1784_v25  ;;  %v408_v15 = vrot.slane %v394_v12, %v1784_v25 }
  0xf2   : > { %v423_v23 = vshrl.u32 %v375_v13, 16  ;;  %v439_v33 = vshrl.u32 %v376_v16, 16 }
  0xf3   : > { %v409_v19 = vcombine.high %v401_v14, %v1579_v38  ;;  %v410_v20 = vcombine.high %v408_v15, %v1579_v38  ;;  %v413_v21 = vpack.i.b16 %v401_v14, %v367_v9  ;;  %v416_v22 = vshrl.u32 %v401_v14, 16 }
  0xf4   : > { %v429_v24 = vpack.i.b16 %v408_v15, %v374_v10  ;;  %v432_v27 = vshrl.u32 %v408_v15, 16 }
  0xf5   : > { %v417_v28 = vpack.i.b16 %v416_v22, %v415_v17  ;;  %v421_v29 = vpack.i.b16 %v409_v19, %v375_v13  ;;  %v424_v30 = vshrl.u32 %v409_v19, 16  ;;  %v437_v31 = vpack.i.b16 %v410_v20, %v376_v16 }
  0xf6   : > { %v433_v32 = vpack.i.b16 %v432_v27, %v431_v26  ;;  %v440_v34 = vshrl.u32 %v410_v20, 16  ;;  %v443_v35 = vcombine.low %v413_v21, %v429_v24 }
  0xf7   : > { %v425_v37 = vpack.i.b16 %v424_v30, %v423_v23  ;;  %v451_v39 = vcombine.low %v421_v29, %v437_v31  ;;  %v1266_v30 = vld [vmem:[%s1969_s2] ss:$0 sm:$0xff] }
  0xf8   : > { %v441_v40 = vpack.i.b16 %v440_v34, %v439_v33  ;;  %v477_v41 = vcombine.low %v417_v28, %v433_v32  ;;  %v450_v42 = vrot.slane %v443_v35, %v1781_v18 }
  0xf9   : > { %v458_v43 = vrot.slane %v451_v39, %v1781_v18 }
  0xfa   : > { %v485_v44 = vcombine.low %v425_v37, %v441_v40  ;;  %v484_v48 = vrot.slane %v477_v41, %v1781_v18 }
  0xfb   : > { %v459_v46 = vcombine.low %v450_v42, %v458_v43  ;;  %v460_v47 = vcombine.high %v450_v42, %v458_v43 }
  0xfc   : > { %v492_v49 = vrot.slane %v485_v44, %v1781_v18 }
  0xfd   : > { %v467_v51 = vrot.slane %v459_v46, %v1784_v25  ;;  %v474_v54 = vrot.slane %v460_v47, %v1784_v25 }
  0xfe   : > { %v494_v50 = vcombine.high %v484_v48, %v492_v49  ;;  %v493_v52 = vcombine.low %v484_v48, %v492_v49 }
  0xff   : > { %v514_v58 = vshrl.u32 %v467_v51, 16  ;;  %v475_v1 = vcombine.high %v467_v51, %v1579_v38  ;;  %v526_v5 = vshrl.u32 %v474_v54, 16  ;;  %v476_v8 = vcombine.high %v474_v54, %v1579_v38 }
 0x100   : > { %v508_v55 = vrot.slane %v494_v50, %v1784_v25  ;;  %v501_v56 = vrot.slane %v493_v52, %v1784_v25 }
 0x101   : > { %v520_v11 = vshrl.u32 %v475_v1, 16  ;;  %v532_v14 = vshrl.u32 %v476_v8, 16 }
 0x102   : > { %v525_v57 = vpack.i.b16 %v508_v55, %v474_v54  ;;  %v515_v59 = vshrl.u32 %v501_v56, 16  ;;  %v509_v60 = vcombine.high %v501_v56, %v1579_v38  ;;  %v513_v62 = vpack.i.b16 %v501_v56, %v467_v51 }
 0x103   : > { %v527_v2 = vshrl.u32 %v508_v55, 16  ;;  %v510_v6 = vcombine.high %v508_v55, %v1579_v38 }
 0x104   : > { %541 = vrot.lane.b32.xlu0 %v525_v57, %s1571_s10  ;;  %v516_v63 = vpack.i.b16 %v515_v59, %v514_v58  ;;  %v519_v4 = vpack.i.b16 %v509_v60, %v475_v1  ;;  %v521_v9 = vshrl.u32 %v509_v60, 16 }
 0x105   : > { %v528_v7 = vpack.i.b16 %v527_v2, %v526_v5  ;;  %v531_v10 = vpack.i.b16 %v510_v6, %v476_v8  ;;  %v533_v13 = vshrl.u32 %v510_v6, 16 }
 0x106   : > { %535 = vrot.lane.b32.xlu1 %v516_v63, %s1575_s18  ;;  %v522_v12 = vpack.i.b16 %v521_v9, %v520_v11 }
 0x107   : > { %v534_v15 = vpack.i.b16 %v533_v13, %v532_v14 }
 0x108   : > { %537 = vrot.lane.b32.xlu0 %v519_v4, %s1573_s11 }
 0x10a   : > { %543 = vrot.lane.b32.xlu1 %v528_v7, %s1569_s24 }
 0x10c   : > { %545 = vrot.lane.b32.xlu0 %v531_v10, %s1572_s22 }
 0x10e   : > { %539 = vrot.lane.b32.xlu1 %v522_v12, %s1574_s20 }
 0x112   : > { %547 = vrot.lane.b32.xlu1 %v534_v15, %s1570_s9 }
 0x176   : > { %v542_v3 = vpop.permute.xlu0 %541 }
 0x178   : > { %v536_v16 = vpop.permute.xlu1 %535 }
 0x179   : > { %v552_v38 = vsel %vm549_vm1, %v513_v62, %v536_v16 }
 0x17a   : > { %v538_v19 = vpop.permute.xlu0 %537 }
 0x17b   : > { %v555_v20 = vsel %vm553_vm2, %v552_v38, %v538_v19 }
 0x17c   : > { %v544_v17 = vpop.permute.xlu1 %543 }
 0x17e   : > { %v546_v24 = vpop.permute.xlu0 %545 }
 0x180   : > { %v540_v21 = vpop.permute.xlu1 %539 }
 0x181   : > { %v558_v22 = vsel %vm556_vm3, %v555_v20, %v540_v21 }
 0x182   : > { %v561_v23 = vsel %vm559_vm4, %v558_v22, %v542_v3 }
 0x183   : > { %v564_v26 = vsel %vm562_vm5, %v561_v23, %v544_v17 }
 0x184   : > { %v548_v27 = vpop.permute.xlu1 %547  ;;  %v567_v28 = vsel %vm565_vm6, %v564_v26, %v546_v24 }
 0x185   : > { %v570_v29 = vsel %vm568_vm7, %v567_v28, %v548_v27 }
 0x186   : > { %1321 = vmatmul.mubr.bf16.vlgmr.msra.gmra.mrb[0].mxu0 %v570_v29 }
 0x259   : > { %v677_v31 = vpop.f32.mrb[0].mxu0 }
 0x25a   : > { %v678_v32 = vadd.f32 %v1266_v30, %v677_v31  ;;  %v1322_v33 = vpop.f32.mrb[1].mxu0 }
 0x25b   : > { %v680_v34 = vpop.f32.mrb[2].mxu0 }
 0x25c   : > { %687 = vrot.lane.b32.xlu1 %v678_v32, %s1572_s22  ;;  %684 = vrot.lane.b32.xlu0 %v678_v32, %s1570_s9  ;;  %v1323_v35 = vpop.f32.mrb[3].mxu0 }
 0x260   : > { %693 = vrot.lane.b32.xlu1 %v678_v32, %s1571_s10  ;;  %690 = vrot.lane.b32.xlu0 %v678_v32, %s1569_s24 }
 0x264   : > { %699 = vrot.lane.b32.xlu1 %v678_v32, %s1573_s11  ;;  %696 = vrot.lane.b32.xlu0 %v678_v32, %s1574_s20 }
 0x268   : > { %702 = vrot.lane.b32.xlu0 %v678_v32, %s1575_s18 }
 0x2ce   : > { %v688_v36 = vpop.permute.xlu1 %687  ;;  %v685_v37 = vpop.permute.xlu0 %684 }
 0x2cf   : > { %v705_v39 = vcombine.low %v678_v32, %v688_v36  ;;  %v706_v40 = vcombine.high %v678_v32, %v688_v36 }
 0x2d1   : > { %v713_v45 = vrot.slane %v705_v39, %v1781_v18  ;;  %v720_v46 = vrot.slane %v706_v40, %v1781_v18 }
 0x2d2   : > { %v694_v41 = vpop.permute.xlu1 %693  ;;  %v691_v42 = vpop.permute.xlu0 %690 }
 0x2d3   : > { %v721_v43 = vcombine.low %v685_v37, %v691_v42  ;;  %v722_v44 = vcombine.high %v685_v37, %v691_v42 }
 0x2d5   : > { %v729_v47 = vrot.slane %v721_v43, %v1781_v18  ;;  %v736_v48 = vrot.slane %v722_v44, %v1781_v18 }
 0x2d6   : > { %v697_v49 = vpop.permute.xlu0 %696  ;;  %v700_v54 = vpop.permute.xlu1 %699 }
 0x2d7   : > { %v769_v50 = vcombine.low %v713_v45, %v729_v47  ;;  %v770_v51 = vcombine.high %v713_v45, %v729_v47  ;;  %v785_v52 = vcombine.low %v720_v46, %v736_v48  ;;  %v786_v53 = vcombine.high %v720_v46, %v736_v48 }
 0x2d8   : > { %v737_v59 = vcombine.low %v694_v41, %v700_v54  ;;  %v738_v60 = vcombine.high %v694_v41, %v700_v54 }
 0x2d9   : > { %v777_v55 = vrot.slane %v769_v50, %v1784_v25  ;;  %v784_v56 = vrot.slane %v770_v51, %v1784_v25  ;;  %v793_v57 = vrot.slane %v785_v52, %v1784_v25  ;;  %v800_v58 = vrot.slane %v786_v53, %v1784_v25 }
 0x2da   : > { %v703_v61 = vpop.permute.xlu0 %702  ;;  %v745_v10 = vrot.slane %v737_v59, %v1781_v18  ;;  %v752_v11 = vrot.slane %v738_v60, %v1781_v18 }
 0x2db   : > { %v1275_v62 = vcombine.low %v777_v55, %v784_v56  ;;  %v1277_v63 = vcombine.high %v777_v55, %v784_v56  ;;  %v1279_v1 = vcombine.low %v793_v57, %v800_v58  ;;  %v1281_v2 = vcombine.high %v793_v57, %v800_v58 }
 0x2dc   : > { %v753_v4 = vcombine.low %v697_v49, %v703_v61  ;;  %v754_v5 = vcombine.high %v697_v49, %v703_v61 }
 0x2dd   : > { %v849_v6 = vrot.slane %v1275_v62, %v1781_v18  ;;  %v865_v7 = vrot.slane %v1277_v63, %v1781_v18  ;;  %v881_v8 = vrot.slane %v1279_v1, %v1781_v18  ;;  %v897_v9 = vrot.slane %v1281_v2, %v1781_v18 }
 0x2de   : > { %v761_v12 = vrot.slane %v753_v4, %v1781_v18  ;;  %v768_v13 = vrot.slane %v754_v5, %v1781_v18 }
 0x2df   : > { %v905_v14 = vcombine.low %v849_v6, %v865_v7  ;;  %v906_v15 = vcombine.high %v849_v6, %v865_v7  ;;  %v937_v19 = vcombine.low %v881_v8, %v897_v9  ;;  %v938_v20 = vcombine.high %v881_v8, %v897_v9 }
 0x2e0   : > { %v801_v3 = vcombine.low %v745_v10, %v761_v12  ;;  %v802_v16 = vcombine.high %v745_v10, %v761_v12  ;;  %v817_v17 = vcombine.low %v752_v11, %v768_v13  ;;  %v818_v38 = vcombine.high %v752_v11, %v768_v13 }
 0x2e1   : > { %v913_v21 = vrot.slane %v905_v14, %v1784_v25  ;;  %v920_v22 = vrot.slane %v906_v15, %v1784_v25  ;;  %v945_v34 = vrot.slane %v937_v19, %v1784_v25  ;;  %v952_v35 = vrot.slane %v938_v20, %v1784_v25 }
 0x2e2   : > { %v809_v23 = vrot.slane %v801_v3, %v1784_v25  ;;  %v816_v24 = vrot.slane %v802_v16, %v1784_v25  ;;  %v825_v26 = vrot.slane %v817_v17, %v1784_v25  ;;  %v832_v27 = vrot.slane %v818_v38, %v1784_v25 }
 0x2e3   : > { %v1283_v32 = vcombine.low %v913_v21, %v920_v22  ;;  %v1285_v33 = vcombine.high %v913_v21, %v920_v22  ;;  %v1284_v47 = vcombine.low %v945_v34, %v952_v35  ;;  %v1286_v48 = vcombine.high %v945_v34, %v952_v35 }
 0x2e4   : > { %v1276_v28 = vcombine.low %v809_v23, %v816_v24  ;;  %v1278_v29 = vcombine.high %v809_v23, %v816_v24  ;;  %v1280_v30 = vcombine.low %v825_v26, %v832_v27  ;;  %v1282_v31 = vcombine.high %v825_v26, %v832_v27 }
 0x2e5   : > { %v985_v45 = vrot.slane %v1283_v32, %v1781_v18  ;;  %v1001_v46 = vrot.slane %v1285_v33, %v1781_v18  ;;  %v992_v59 = vrot.slane %v1284_v47, %v1781_v18  ;;  %v1008_v60 = vrot.slane %v1286_v48, %v1781_v18 }
 0x2e6   : > { %v856_v36 = vrot.slane %v1276_v28, %v1781_v18  ;;  %v872_v37 = vrot.slane %v1278_v29, %v1781_v18  ;;  %v888_v39 = vrot.slane %v1280_v30, %v1781_v18  ;;  %v904_v40 = vrot.slane %v1282_v31, %v1781_v18 }
 0x2e7   : > { %v1042_v57 = vcombine.high %v985_v45, %v1001_v46  ;;  %v1041_v58 = vcombine.low %v985_v45, %v1001_v46  ;;  %v1057_v6 = vcombine.low %v992_v59, %v1008_v60  ;;  %v1058_v3 = vcombine.high %v992_v59, %v1008_v60 }
 0x2e8   : > { %v921_v41 = vcombine.low %v856_v36, %v872_v37  ;;  %v922_v42 = vcombine.high %v856_v36, %v872_v37  ;;  %v953_v43 = vcombine.low %v888_v39, %v904_v40  ;;  %v954_v44 = vcombine.high %v888_v39, %v904_v40 }
 0x2e9   : > { %v1056_v7 = vrot.slane %v1042_v57, %v1784_v25  ;;  %v1049_v9 = vrot.slane %v1041_v58, %v1784_v25  ;;  %v1072_v19 = vrot.slane %v1058_v3, %v1784_v25 }
 0x2ea   : > { %v929_v49 = vrot.slane %v921_v41, %v1784_v25  ;;  %v936_v50 = vrot.slane %v922_v42, %v1784_v25  ;;  %v961_v51 = vrot.slane %v953_v43, %v1784_v25  ;;  %v968_v52 = vrot.slane %v954_v44, %v1784_v25 }
 0x2ec   : > { %v1287_v53 = vcombine.low %v929_v49, %v936_v50  ;;  %v1289_v54 = vcombine.high %v929_v49, %v936_v50  ;;  %v1288_v55 = vcombine.low %v961_v51, %v968_v52  ;;  %v1290_v56 = vcombine.high %v961_v51, %v968_v52 }
 0x2ee   : > { %v1017_v61 = vrot.slane %v1287_v53, %v1781_v18  ;;  %v1033_v62 = vrot.slane %v1289_v54, %v1781_v18  ;;  %v1024_v63 = vrot.slane %v1288_v55, %v1781_v18  ;;  %v1040_v1 = vrot.slane %v1290_v56, %v1781_v18 }
 0x2ef   : > { %v1065_v18 = vrot.slane %v1057_v6, %v1784_v25 }
 0x2f0   : > { %v1074_v2 = vcombine.high %v1017_v61, %v1033_v62  ;;  %v1073_v4 = vcombine.low %v1017_v61, %v1033_v62  ;;  %v1089_v5 = vcombine.low %v1024_v63, %v1040_v1  ;;  %v1090_v14 = vcombine.high %v1024_v63, %v1040_v1 }
 0x2f2   : > { %v1088_v8 = vrot.slane %v1074_v2, %v1784_v25  ;;  %v1081_v10 = vrot.slane %v1073_v4, %v1784_v25  ;;  %v1097_v13 = vrot.slane %v1089_v5, %v1784_v25  ;;  %v1104_v38 = vrot.slane %v1090_v14, %v1784_v25 }
 0x2f4   : > { %v1107_v11 = vcombine.low %v1056_v7, %v1088_v8  ;;  %v1106_v12 = vcombine.high %v1049_v9, %v1081_v10  ;;  %v1105_v15 = vcombine.low %v1049_v9, %v1081_v10  ;;  %v1109_v16 = vcombine.low %v1065_v18, %v1097_v13 }
 0x2f5   : > { %v1108_v17 = vcombine.high %v1056_v7, %v1088_v8  ;;  %v1111_v20 = vcombine.low %v1072_v19, %v1104_v38  ;;  %v1110_v21 = vcombine.high %v1065_v18, %v1097_v13  ;;  %v1112_v22 = vcombine.high %v1072_v19, %v1104_v38 }
 0x2f6   : > { %1118 = vrot.lane.b32.xlu0 %v1107_v11, %s1573_s11  ;;  %1114 = vrot.lane.b32.xlu1 %v1106_v12, %s1575_s18 }
 0x2fa   : > { %1126 = vrot.lane.b32.xlu0 %v1109_v16, %s1571_s10  ;;  %1122 = vrot.lane.b32.xlu1 %v1108_v17, %s1574_s20 }
 0x2fe   : > { %1134 = vrot.lane.b32.xlu0 %v1111_v20, %s1572_s22  ;;  %1130 = vrot.lane.b32.xlu1 %v1110_v21, %s1569_s24  ;;  %s1581_s24 = smov [#allocation7]  }
 0x302   : > { %1138 = vrot.lane.b32.xlu1 %v1112_v22, %s1570_s9  ;;  %s1481_s9 = sshll.u32 %s1581_s24, 4  ;;  %s1482_s9 = int_to_ptr.vmem [resolvable:$false] %s1481_s9 }
 0x303   : > { %s1483_s10 = scalar_lea.vmem %s1482_s9, 256  ;;  %p1484_p12 = scmp.lt.s32.totalorder %s1920_s8, %s1482_s9 }
 0x304   : > { %p1485_p11 = scmp.lt.s32.totalorder %s1483_s10, %s1477_s25 }
 0x306   : > { %p1486_p0 = por %p1485_p11, %p1484_p12 }
 0x308   : > { %p1487_p5 = pnand %p1486_p0, %p1480_p8 }
 0x368   : > { %v1119_v23 = vpop.permute.xlu0 %1118  ;;  %v1115_v24 = vpop.permute.xlu1 %1114 }
 0x369   : > { %v1141_v26 = vsel %vm549_vm1, %v1105_v15, %v1115_v24 }
 0x36a   : > { %v1142_v29 = vsel %vm553_vm2, %v1141_v26, %v1119_v23 }
 0x36c   : > { %v1127_v27 = vpop.permute.xlu0 %1126  ;;  %v1123_v28 = vpop.permute.xlu1 %1122 }
 0x36d   : > { %v1143_v25 = vsel %vm556_vm3, %v1142_v29, %v1123_v28 }
 0x36e   : > { %v1144_v31 = vsel %vm559_vm4, %v1143_v25, %v1127_v27 }
 0x370   : > { %v1131_v30 = vpop.permute.xlu1 %1130  ;;  %v1135_v32 = vpop.permute.xlu0 %1134 }
 0x371   : > { %v1145_v33 = vsel %vm562_vm5, %v1144_v31, %v1131_v30 }
 0x372   : > { %v1146_v35 = vsel %vm565_vm6, %v1145_v33, %v1135_v32 }
 0x374   : > { %v1139_v34 = vpop.permute.xlu1 %1138 }
 0x375   : > { %v1147_v36 = vsel %vm568_vm7, %v1146_v35, %v1139_v34 }
 0x376   : > { %v1148_v37 = vadd.f32 %v1147_v36, %v1765_v0 }
 0x378   : > { %1149 = vst [vmem:[%s217_s7] sm:$0xff] %v1148_v37 }
 0x379   : > { %1490 = shalt.err (!%p1487_p5)
}
 0x37a   : > { %s1491_s19 = scalar_lea.hbm %s1918_s4, 128  ;;  %s1495_s20 = scalar_lea.hbm %s1970_s3, 256 }
 0x37b   : > { %p1492_p9 = scmp.ne.s32.totalorder %s1918_s4, %s1491_s19  ;;  %p1496_p7 = scmp.lt.u32.totalorder %s1918_s4, %s1970_s3 }
 0x37c   : > { %p1497_p3 = scmp.lt.u32.totalorder %s1495_s20, %s1491_s19  ;;  %p1499_p4 = scmp.lt.u32.totalorder %s1491_s19, %s1918_s4 }
 0x37d   : > { %p1493_p1 = pnand %p1492_p9, %p1698_p10 }
 0x37e   : > { %p1498_p13 = por %p1497_p3, %p1496_p7 }
 0x37f   : > { %p1494_p2 = pneg %p1493_p1 }
 0x380   : > { %p1500_p6 = por %p1499_p4, %p1498_p13 }
 0x382   : > { %p1501_p8 = pnand %p1500_p6, %p1494_p2 }
 0x384   : > { %1504 = shalt.err (!%p1501_p8)
}
 0x385   : > { %1330 = dma.vmem_to_hbm [thread:$0]  (%p1698_p10), %s1920_s8, 128, %s1918_s4, %s1151_s15  }
 0x386 PF: > { %s1177_s6 = sand.u32 1, %s1543_s12   ;;  %p1988_p12 = scmp.ne.s32.totalorder %s1978_s23, 0 }
 0x387   : > { %p1989_p11 = scmp.ge.s32.totalorder %s1563_s17, 2  ;;  %s1178_s26 = scalar_lea.sflag [#allocation4], %s1177_s6 }
 0x389   : > { %p1341_p0 = pnand %p1989_p11, %p1988_p12 }
 0x38b   : > { %1538 = dma.done.wait (!%p1341_p0), %s1178_s26, 128  }
 0x38c   : > { %1540 = vsyncadd (!%p1341_p0), %s1178_s26, 4294967168  ;;  %s20_s17 = sadd.s32 1, %s1563_s17   ;;  %s1990_s12 = smov %s1547_s13 }
 0x38d   : > { %p17_p5 = scmp.ge.s32.totalorder %s20_s17, 4   ;;  %s1991_s13 = smov %s1551_s14 }
 0x38e   : > { %s1992_s14 = smov %s1707_s5  ;;  %s1993_s15 = smov %s1559_s16 }
 0x38f   : > { %s1994_s16 = smov %s1996_s28  ;;  %19 = sbr.rel (!%p17_p5) target bundleno = 7 (0x7), region = 81 }
 0x396   :  { %1183 = vsyncpa [#allocation3], 1 }
 0x397   :  { %1185 = vsyncpa [#allocation3 + $0x1], 1 }
 0x398   :  { %1186 = vsyncpa [#allocation6], 1 }
 0x399   :  { %1187 = vsyncpa [#allocation4], 1 }
 0x39a   :  { %1189 = vsyncpa [#allocation4 + $0x1], 1 }

</bundles_post_ra>
